<compile_context>
chip_gen: v7x
topology: tpu7x:2x2x1
jax: 0.10.0
libtpu: 0.0.40
codegen_flags: <defaults>
</compile_context>

<pallas_src>
import functools
import math

import jax
import jax.numpy as jnp
from jax.experimental import pallas as pl
from jax.experimental.pallas import tpu as pltpu

LANE = 128
SUBLANE = 8


def _round_up(n, m):
    return ((n + m - 1) // m) * m


def mlpae_kernel(x_ref,
                 w1_ref, b1_ref,
                 w2_ref, b2_ref,
                 w3_ref, b3_ref,
                 w4_ref, b4_ref,
                 o_ref,
                 *, use_relu=True):
    """One batch tile of the fused MLP autoencoder forward.

    x_ref : (bm, D0)   flattened input tile (bf16 by default)
    w*_ref: (in, out)  lane-padded weights (bf16), VMEM-resident (constant index_map)
    b*_ref: (1, out)   lane-padded biases (f32, zero in padded lanes)
    o_ref : (bm, D0)   reconstructed flat output tile
    """
    compute_dtype = w1_ref.dtype

    def layer(h, w_ref, b_ref):
        acc = jnp.dot(h.astype(compute_dtype), w_ref[...],
                      preferred_element_type=jnp.float32)
        acc = acc + b_ref[...]
        return jnp.maximum(acc, 0.0) if use_relu else acc

    h = layer(x_ref[...], w1_ref, b1_ref)   # encoder: Linear(D0, C1) (+ ReLU)
    h = layer(h, w2_ref, b2_ref)            # encoder: Linear(C1, C2) (+ ReLU)
    h = layer(h, w3_ref, b3_ref)            # decoder: Linear(C2, C1) (+ ReLU)
    h = layer(h, w4_ref, b4_ref)            # decoder: Linear(C1, D0) (+ ReLU, per module)
    o_ref[...] = h.astype(o_ref.dtype)


def prepare_params(params, *, weight_dtype=jnp.bfloat16):
    """One-time init (hoisted out of the forward): zero-pad each Linear to
    lane-aligned dims and cast weights to the MXU dtype.  Padding is a mathematical
    no-op (zero rows/cols + zero bias lanes).  Call once, reuse across calls."""
    # TODO(synk): on v7x, the two (1024x128) weights could be stored fp8 (e4m3) with
    # f32 MXU accumulation to cut small-batch weight HBM traffic; validate accuracy first.
    padded = []
    for (w, b) in params:
        fan_in, fan_out = w.shape
        pin, pout = _round_up(fan_in, LANE), _round_up(fan_out, LANE)
        w_p = jnp.zeros((pin, pout), weight_dtype).at[:fan_in, :fan_out].set(
            w.astype(weight_dtype))
        b_p = jnp.zeros((1, pout), jnp.float32).at[:, :fan_out].set(
            b.reshape(1, -1).astype(jnp.float32))
        padded.append((w_p, b_p))
    return padded


def _pick_batch_tile(batch, bm):
    """Sublane-aligned tile, <= batch, and >= 2 grid steps whenever possible so
    ("parallel",) shards across v7x's two TensorCores (no-op on v5e/v6e)."""
    if batch <= SUBLANE:
        return batch                                  # block == full batch dim (always legal)
    bm = max(SUBLANE, (min(bm, batch) // SUBLANE) * SUBLANE)
    if (batch + bm - 1) // bm < 2 and batch >= 2 * SUBLANE:
        bm = _round_up((batch + 1) // 2, SUBLANE)
    return bm


def _estimate_vmem_bytes(bm, d0_pad, pparams, in_itemsize, out_itemsize):
    stream = 2 * bm * d0_pad * (in_itemsize + out_itemsize)      # double-buffered x/out tiles
    weights = 2 * sum(int(w.size) * w.dtype.itemsize + int(b.size) * b.dtype.itemsize
                      for w, b in pparams)                       # double-buffered constants
    interm = bm * d0_pad * 4 + 3 * bm * LANE * 4                 # f32 intermediates
    return stream + weights + interm


def mlpae_forward(x, padded_params, *, bm=512, activation="relu",
                  activation_dtype=jnp.bfloat16, out_dtype=None):
    """x: (B, *shape) float.  padded_params: output of prepare_params()."""
    B = x.shape[0]
    shape = x.shape[1:]
    d0 = math.prod(shape)
    d0_pad = _round_up(d0, LANE)
    out_dtype = x.dtype if out_dtype is None else out_dtype

    # nn.Flatten(1) + cast the streamed activations at the pallas_call boundary.
    # The kernel fed the MXU bf16 already, so numerics are unchanged; input HBM
    # bytes halve when this cast fuses with the producer under jit.
    x_flat = x.reshape(B, d0).astype(activation_dtype)
    if d0_pad != d0:
        # Zero-pad features so padded lanes always meet zero weight rows
        # (never garbage * weight).  No-op when D0 is already lane-aligned.
        x_flat = jnp.pad(x_flat, ((0, 0), (0, d0_pad - d0)))

    bm = _pick_batch_tile(B, bm)
    grid = (pl.cdiv(B, bm),)
    # Ragged last tile (B % bm != 0): Pallas partial-block masking drops writes for
    # rows past B; matmul rows are independent so garbage rows cannot contaminate
    # valid rows.  No wrapper-side batch pad and no output slice copy needed.

    (w1, b1), (w2, b2), (w3, b3), (w4, b4) = padded_params

    # Weights/biases: constant block index -> DMA'd once, VMEM-resident while the
    # batch tiles stream double-buffered through the auto-pipeline.
    # TODO(synk): mark these pipeline_mode=pl.Buffered(1) (single-buffered) once
    # verified on the target jax version; frees ~0.6 MiB VMEM for larger bm on v7x.
    def const_spec(arr):
        return pl.BlockSpec(arr.shape, lambda i: (0, 0))

    x_spec = pl.BlockSpec((bm, d0_pad), lambda i: (i, 0))
    o_spec = pl.BlockSpec((bm, d0_pad), lambda i: (i, 0))

    flops = 2 * B * sum(int(w.shape[0]) * int(w.shape[1]) for w, _ in padded_params)
    bytes_accessed = (sum(int(w.size) * w.dtype.itemsize + int(b.size) * b.dtype.itemsize
                          for w, b in padded_params)
                      + B * d0_pad * (jnp.dtype(activation_dtype).itemsize
                                      + jnp.dtype(out_dtype).itemsize))

    # Raise scoped VMEM only when the estimated residency exceeds v5e's 16 MiB
    # default scoped limit; clamp at v7x's 64 MiB physical VMEM.
    vmem_needed = _estimate_vmem_bytes(bm, d0_pad, padded_params,
                                       jnp.dtype(activation_dtype).itemsize,
                                       jnp.dtype(out_dtype).itemsize)
    vmem_limit = None
    if vmem_needed > (14 << 20):
        vmem_limit = int(min(vmem_needed * 3 // 2, 64 << 20))

    out_flat = pl.pallas_call(
        functools.partial(mlpae_kernel, use_relu=(activation == "relu")),
        out_shape=jax.ShapeDtypeStruct((B, d0_pad), out_dtype),
        grid=grid,
        in_specs=[x_spec,
                  const_spec(w1), const_spec(b1),
                  const_spec(w2), const_spec(b2),
                  const_spec(w3), const_spec(b3),
                  const_spec(w4), const_spec(b4)],
        out_specs=o_spec,
        compiler_params=pltpu.CompilerParams(
            dimension_semantics=("parallel",),
            vmem_limit_bytes=vmem_limit),
        cost_estimate=pl.CostEstimate(
            flops=flops, transcendentals=0, bytes_accessed=bytes_accessed),
    )(x_flat, w1, b1, w2, b2, w3, b3, w4, b4)

    if d0_pad != d0:
        out_flat = out_flat[:, :d0]
    return out_flat.reshape((B,) + shape)   # Reshape(shape)


def init_linear(key, fan_in, fan_out):
    """Deterministic init mimicking torch.nn.Linear (uniform +-1/sqrt(fan_in)).
    Returns w with shape (fan_in, fan_out) (transposed vs. torch) and b (1, fan_out)."""
    kw, kb = jax.random.split(key)
    bound = 1.0 / math.sqrt(fan_in)
    w = jax.random.uniform(kw, (fan_in, fan_out), jnp.float32, -bound, bound)
    b = jax.random.uniform(kb, (1, fan_out), jnp.float32, -bound, bound)
    return w, b


def reference_forward(x, params, *, weight_dtype=jnp.bfloat16):
    """Pure-JAX reference mirroring the kernel's compute dtypes (unpadded weights)."""
    B = x.shape[0]
    shape = x.shape[1:]
    h = x.reshape(B, -1)
    for (w, b) in params:
        acc = jnp.dot(h.astype(weight_dtype), w.astype(weight_dtype),
                      preferred_element_type=jnp.float32)
        h = jnp.maximum(acc + b.reshape(1, -1).astype(jnp.float32), 0.0)
    return h.reshape((B,) + shape)


if __name__ == "__main__":
    # Module config: MLPAE(shape=(4,16,16), channels=[64,32], activation=ReLU)
    shape = (4, 16, 16)               # (C, H, W)
    channels = [64, 32]
    B = 2

    d0 = math.prod(shape)             # 1024
    dims = [d0] + channels            # [1024, 64, 32]

    key = jax.random.PRNGKey(0)
    k_x, k1, k2, k3, k4 = jax.random.split(key, 5)

    # encoder linears: (1024->64), (64->32); decoder linears: (32->64), (64->1024)
    enc1 = init_linear(k1, dims[0], dims[1])
    enc2 = init_linear(k2, dims[1], dims[2])
    dec1 = init_linear(k3, dims[2], dims[1])
    dec2 = init_linear(k4, dims[1], dims[0])
    params = [enc1, enc2, dec1, dec2]

    x = jax.random.normal(k_x, (B,) + shape, jnp.float32)

    # One-time init (hoisted out of the forward): pad + cast weights once.
    padded_params = prepare_params(params, weight_dtype=jnp.bfloat16)

    fwd = jax.jit(mlpae_forward)
    out = jax.block_until_ready(fwd(x, padded_params))

    ref = reference_forward(x, params)
    assert out.shape == (B,) + shape
    assert bool(jnp.allclose(out, ref, atol=1e-2, rtol=1e-2)), "mismatch vs. pure-JAX reference"

    print("KERNEL_OK")
</pallas_src>

<mosaic_0001>
module attributes {stable_mosaic.version = 11 : i64} {
  func.func @mlpae_kernel(%arg0: i32, %arg1: memref<2x1024xbf16, #tpu.memory_space<vmem>>, %arg2: memref<1024x128xbf16, #tpu.memory_space<vmem>>, %arg3: memref<1x128xf32, #tpu.memory_space<vmem>>, %arg4: memref<128x128xbf16, #tpu.memory_space<vmem>>, %arg5: memref<1x128xf32, #tpu.memory_space<vmem>>, %arg6: memref<128x128xbf16, #tpu.memory_space<vmem>>, %arg7: memref<1x128xf32, #tpu.memory_space<vmem>>, %arg8: memref<128x1024xbf16, #tpu.memory_space<vmem>>, %arg9: memref<1x1024xf32, #tpu.memory_space<vmem>>, %arg10: memref<2x1024xf32, #tpu.memory_space<vmem>>) attributes {dimension_semantics = [#tpu.dimension_semantics<parallel>], iteration_bounds = array<i64: 1>, scalar_prefetch = 0 : i64, scratch_operands = 0 : i64, tpu.core_type = #tpu.core_type<tc>, window_params = [{transform_indices = @transform_0, window_bounds = array<i64: 2, 1024>}, {pipeline_mode = #tpu.pipeline_mode<synchronous>, transform_indices = @transform_1, window_bounds = array<i64: 1024, 128>}, {pipeline_mode = #tpu.pipeline_mode<synchronous>, transform_indices = @transform_2, window_bounds = array<i64: 1, 128>}, {pipeline_mode = #tpu.pipeline_mode<synchronous>, transform_indices = @transform_3, window_bounds = array<i64: 128, 128>}, {pipeline_mode = #tpu.pipeline_mode<synchronous>, transform_indices = @transform_4, window_bounds = array<i64: 1, 128>}, {pipeline_mode = #tpu.pipeline_mode<synchronous>, transform_indices = @transform_5, window_bounds = array<i64: 128, 128>}, {pipeline_mode = #tpu.pipeline_mode<synchronous>, transform_indices = @transform_6, window_bounds = array<i64: 1, 128>}, {pipeline_mode = #tpu.pipeline_mode<synchronous>, transform_indices = @transform_7, window_bounds = array<i64: 128, 1024>}, {pipeline_mode = #tpu.pipeline_mode<synchronous>, transform_indices = @transform_8, window_bounds = array<i64: 1, 1024>}, {transform_indices = @transform_9, window_bounds = array<i64: 2, 1024>}]} {
    %c0 = arith.constant 0 : index
    %c0_0 = arith.constant 0 : index
    %0 = vector.load %arg1[%c0, %c0_0] : memref<2x1024xbf16, #tpu.memory_space<vmem>>, vector<2x1024xbf16>
    %c0_1 = arith.constant 0 : index
    %c0_2 = arith.constant 0 : index
    %1 = vector.load %arg2[%c0_1, %c0_2] : memref<1024x128xbf16, #tpu.memory_space<vmem>>, vector<1024x128xbf16>
    %cst = arith.constant dense<0.000000e+00> : vector<2x128xf32>
    %2 = tpu.matmul %0, %1, %cst {dimension_numbers = #tpu.dot_dimension_numbers<[1], [0], [0], [1], [0, 0, 1, 1], [], []>} : vector<2x1024xbf16>, vector<1024x128xbf16>, vector<2x128xf32> -> vector<2x128xf32>
    %c0_3 = arith.constant 0 : index
    %c0_4 = arith.constant 0 : index
    %3 = vector.load %arg3[%c0_3, %c0_4] : memref<1x128xf32, #tpu.memory_space<vmem>>, vector<1x128xf32>
    %4 = vector.broadcast %3 : vector<1x128xf32> to vector<2x128xf32>
    %5 = arith.addf %2, %4 : vector<2x128xf32>
    %cst_5 = arith.constant 0.000000e+00 : f32
    %6 = vector.broadcast %cst_5 : f32 to vector<2x128xf32>
    %7 = arith.maximumf %5, %6 : vector<2x128xf32>
    %8 = arith.truncf %7 : vector<2x128xf32> to vector<2x128xbf16>
    %c0_6 = arith.constant 0 : index
    %c0_7 = arith.constant 0 : index
    %9 = vector.load %arg4[%c0_6, %c0_7] : memref<128x128xbf16, #tpu.memory_space<vmem>>, vector<128x128xbf16>
    %cst_8 = arith.constant dense<0.000000e+00> : vector<2x128xf32>
    %10 = tpu.matmul %8, %9, %cst_8 {dimension_numbers = #tpu.dot_dimension_numbers<[1], [0], [0], [1], [0, 0, 1, 1], [], []>} : vector<2x128xbf16>, vector<128x128xbf16>, vector<2x128xf32> -> vector<2x128xf32>
    %c0_9 = arith.constant 0 : index
    %c0_10 = arith.constant 0 : index
    %11 = vector.load %arg5[%c0_9, %c0_10] : memref<1x128xf32, #tpu.memory_space<vmem>>, vector<1x128xf32>
    %12 = vector.broadcast %11 : vector<1x128xf32> to vector<2x128xf32>
    %13 = arith.addf %10, %12 : vector<2x128xf32>
    %cst_11 = arith.constant 0.000000e+00 : f32
    %14 = vector.broadcast %cst_11 : f32 to vector<2x128xf32>
    %15 = arith.maximumf %13, %14 : vector<2x128xf32>
    %16 = arith.truncf %15 : vector<2x128xf32> to vector<2x128xbf16>
    %c0_12 = arith.constant 0 : index
    %c0_13 = arith.constant 0 : index
    %17 = vector.load %arg6[%c0_12, %c0_13] : memref<128x128xbf16, #tpu.memory_space<vmem>>, vector<128x128xbf16>
    %cst_14 = arith.constant dense<0.000000e+00> : vector<2x128xf32>
    %18 = tpu.matmul %16, %17, %cst_14 {dimension_numbers = #tpu.dot_dimension_numbers<[1], [0], [0], [1], [0, 0, 1, 1], [], []>} : vector<2x128xbf16>, vector<128x128xbf16>, vector<2x128xf32> -> vector<2x128xf32>
    %c0_15 = arith.constant 0 : index
    %c0_16 = arith.constant 0 : index
    %19 = vector.load %arg7[%c0_15, %c0_16] : memref<1x128xf32, #tpu.memory_space<vmem>>, vector<1x128xf32>
    %20 = vector.broadcast %19 : vector<1x128xf32> to vector<2x128xf32>
    %21 = arith.addf %18, %20 : vector<2x128xf32>
    %cst_17 = arith.constant 0.000000e+00 : f32
    %22 = vector.broadcast %cst_17 : f32 to vector<2x128xf32>
    %23 = arith.maximumf %21, %22 : vector<2x128xf32>
    %24 = arith.truncf %23 : vector<2x128xf32> to vector<2x128xbf16>
    %c0_18 = arith.constant 0 : index
    %c0_19 = arith.constant 0 : index
    %25 = vector.load %arg8[%c0_18, %c0_19] : memref<128x1024xbf16, #tpu.memory_space<vmem>>, vector<128x1024xbf16>
    %cst_20 = arith.constant dense<0.000000e+00> : vector<2x1024xf32>
    %26 = tpu.matmul %24, %25, %cst_20 {dimension_numbers = #tpu.dot_dimension_numbers<[1], [0], [0], [1], [0, 0, 1, 1], [], []>} : vector<2x128xbf16>, vector<128x1024xbf16>, vector<2x1024xf32> -> vector<2x1024xf32>
    %c0_21 = arith.constant 0 : index
    %c0_22 = arith.constant 0 : index
    %27 = vector.load %arg9[%c0_21, %c0_22] : memref<1x1024xf32, #tpu.memory_space<vmem>>, vector<1x1024xf32>
    %28 = vector.broadcast %27 : vector<1x1024xf32> to vector<2x1024xf32>
    %29 = arith.addf %26, %28 : vector<2x1024xf32>
    %cst_23 = arith.constant 0.000000e+00 : f32
    %30 = vector.broadcast %cst_23 : f32 to vector<2x1024xf32>
    %31 = arith.maximumf %29, %30 : vector<2x1024xf32>
    %c0_24 = arith.constant 0 : index
    %c0_25 = arith.constant 0 : index
    %32 = vector.load %arg10[%c0_24, %c0_25] : memref<2x1024xf32, #tpu.memory_space<vmem>>, vector<2x1024xf32>
    tpu.vector_store %arg10[%c0_24, %c0_25], %31 {strides = array<i32>} : memref<2x1024xf32, #tpu.memory_space<vmem>>, vector<2x1024xf32>,
    return
  }
  func.func @transform_0(%arg0: i32) -> (i32, i32) {
    %c0_i32 = arith.constant 0 : i32
    %c0_i32_0 = arith.constant 0 : i32
    return %arg0, %c0_i32 : i32, i32
  }
  func.func @transform_1(%arg0: i32) -> (i32, i32) {
    %c0_i32 = arith.constant 0 : i32
    %c0_i32_0 = arith.constant 0 : i32
    %c0_i32_1 = arith.constant 0 : i32
    return %c0_i32, %c0_i32_0 : i32, i32
  }
  func.func @transform_2(%arg0: i32) -> (i32, i32) {
    %c0_i32 = arith.constant 0 : i32
    %c0_i32_0 = arith.constant 0 : i32
    %c0_i32_1 = arith.constant 0 : i32
    return %c0_i32, %c0_i32_0 : i32, i32
  }
  func.func @transform_3(%arg0: i32) -> (i32, i32) {
    %c0_i32 = arith.constant 0 : i32
    %c0_i32_0 = arith.constant 0 : i32
    %c0_i32_1 = arith.constant 0 : i32
    return %c0_i32, %c0_i32_0 : i32, i32
  }
  func.func @transform_4(%arg0: i32) -> (i32, i32) {
    %c0_i32 = arith.constant 0 : i32
    %c0_i32_0 = arith.constant 0 : i32
    %c0_i32_1 = arith.constant 0 : i32
    return %c0_i32, %c0_i32_0 : i32, i32
  }
  func.func @transform_5(%arg0: i32) -> (i32, i32) {
    %c0_i32 = arith.constant 0 : i32
    %c0_i32_0 = arith.constant 0 : i32
    %c0_i32_1 = arith.constant 0 : i32
    return %c0_i32, %c0_i32_0 : i32, i32
  }
  func.func @transform_6(%arg0: i32) -> (i32, i32) {
    %c0_i32 = arith.constant 0 : i32
    %c0_i32_0 = arith.constant 0 : i32
    %c0_i32_1 = arith.constant 0 : i32
    return %c0_i32, %c0_i32_0 : i32, i32
  }
  func.func @transform_7(%arg0: i32) -> (i32, i32) {
    %c0_i32 = arith.constant 0 : i32
    %c0_i32_0 = arith.constant 0 : i32
    %c0_i32_1 = arith.constant 0 : i32
    return %c0_i32, %c0_i32_0 : i32, i32
  }
  func.func @transform_8(%arg0: i32) -> (i32, i32) {
    %c0_i32 = arith.constant 0 : i32
    %c0_i32_0 = arith.constant 0 : i32
    %c0_i32_1 = arith.constant 0 : i32
    return %c0_i32, %c0_i32_0 : i32, i32
  }
  func.func @transform_9(%arg0: i32) -> (i32, i32) {
    %c0_i32 = arith.constant 0 : i32
    %c0_i32_0 = arith.constant 0 : i32
    return %arg0, %c0_i32 : i32, i32
  }
}

</mosaic_0001>

<bundles_post_ra>
// kernel: mlpae_forward.1
= control target key start
LH: loop header
LB: loop body
LE: loop exit
PB: predicated region body
PF: predicated region fallthrough
CT: control target
= control target key end

     0   :  { %14 = vsyncpa [#allocation3], 0  ;;  %s2313_s0 = inlined_call_operand.vmem [shape: bf16[2,1024], index: 0, kind: input, shape index: {}]   ;;  %s2314_s1 = inlined_call_operand.hbm [shape: bf16[1024,128], index: 1, kind: input, shape index: {}]   ;;  %s2315_s2 = inlined_call_operand.vmem [shape: f32[1,128], index: 2, kind: input, shape index: {}]   ;;  %s2316_s3 = inlined_call_operand.vmem [shape: bf16[128,128], index: 3, kind: input, shape index: {}]   ;;  %s2317_s4 = inlined_call_operand.vmem [shape: f32[1,128], index: 4, kind: input, shape index: {}]   ;;  %s2318_s5 = inlined_call_operand.vmem [shape: bf16[128,128], index: 5, kind: input, shape index: {}]   ;;  %s2319_s6 = inlined_call_operand.vmem [shape: f32[1,128], index: 6, kind: input, shape index: {}]   ;;  %s2320_s7 = inlined_call_operand.hbm [shape: bf16[128,1024], index: 7, kind: input, shape index: {}]   ;;  %s2321_s8 = inlined_call_operand.vmem [shape: f32[1,1024], index: 8, kind: input, shape index: {}]   ;;  %s2322_s9 = inlined_call_operand.vmem [shape: f32[2,1024], index: 9, kind: output, shape index: {}]  }
   0x1   :  { %15 = vsyncpa [#allocation5], 0  ;;  %s2110_s30 = smov [#allocation2]   ;;  %s2062_s13 = scalar_lea.hbm %s2314_s1, 8192 }
   0x2   :  { %s23_s10 = sshll.u32 %s2110_s30, 4  ;;  %p2063_p0 = scmp.ne.s32.totalorder %s2314_s1, %s2062_s13  ;;  %s24_s10 = int_to_ptr.vmem [resolvable:$true] %s23_s10 }
   0x3   :  { %p2066_p1 = scmp.lt.u32.totalorder %s2062_s13, %s2314_s1 }
   0x5   :  { %p2068_p2 = pnand %p2066_p1, %p2063_p0 }
   0x7   :  { %2071 = shalt.err (!%p2068_p2)
}
   0x8   :  { %s2072_s18 = scalar_lea.vmem %s24_s10, 8192  ;;  %p2077_p4 = scmp.lt.s32.totalorder %s24_s10, %s24_s10 }
   0x9   :  { %p2073_p3 = scmp.ne.s32.totalorder %s24_s10, %s2072_s18  ;;  %p2078_p5 = scmp.lt.s32.totalorder %s2072_s18, %s2072_s18 }
   0xb   :  { %p2079_p6 = por %p2078_p5, %p2077_p4 }
   0xd   :  { %p2080_p7 = pnand %p2079_p6, %p2073_p3 }
   0xf   :  { %2083 = shalt.err (!%p2080_p7)
}
  0x10   :  { %s2111_s19 = smov 64   ;;  %s2112_s20 = smov 4  }
  0x11   :  { %29 = dma.hbm_to_vmem [thread:$0]  %s2314_s1, 8192, %s24_s10, [#allocation3], %s2111_s19, %s2111_s19, %s2112_s20  }
  0x12   :  { %s2113_s23 = smov [#allocation4]   ;;  %s2084_s27 = scalar_lea.hbm %s2320_s7, 8192 }
  0x13   :  { %s45_s24 = sshll.u32 %s2113_s23, 4  ;;  %p2085_p8 = scmp.ne.s32.totalorder %s2320_s7, %s2084_s27  ;;  %s46_s24 = int_to_ptr.vmem [resolvable:$true] %s45_s24 }
  0x14   :  { %p2088_p9 = scmp.lt.u32.totalorder %s2084_s27, %s2320_s7 }
  0x16   :  { %p2090_p10 = pnand %p2088_p9, %p2085_p8 }
  0x18   :  { %2093 = shalt.err (!%p2090_p10)
}
  0x19   :  { %s2094_s12 = scalar_lea.vmem %s46_s24, 8192  ;;  %p2099_p12 = scmp.lt.s32.totalorder %s46_s24, %s46_s24 }
  0x1a   :  { %p2095_p11 = scmp.ne.s32.totalorder %s46_s24, %s2094_s12  ;;  %p2100_p13 = scmp.lt.s32.totalorder %s2094_s12, %s2094_s12 }
  0x1c   :  { %p2101_p0 = por %p2100_p13, %p2099_p12 }
  0x1e   :  { %p2102_p1 = pnand %p2101_p0, %p2095_p11 }
  0x20   :  { %2105 = shalt.err (!%p2102_p1)
}
  0x21   :  { %s2114_s1 = smov 512   ;;  %s2115_s10 = smov 32  }
  0x22   :  { %51 = dma.hbm_to_vmem [thread:$0]  %s2320_s7, 8192, %s46_s24, [#allocation5], %s2114_s1, %s2114_s1, %s2115_s10  }
  0x23   :  { %2106 = dma.done.wait [#allocation3], 8192  }
  0x24   :  { %2107 = vsyncadd [#allocation3], 4294959104 }
  0x25   :  { %2108 = dma.done.wait [#allocation5], 8192  }
  0x26   :  { %2109 = vsyncadd [#allocation5], 4294959104  ;;  %v1981_v0 = vld [vmem:[#allocation2 + $0x40] sm:$0xff]   ;;  %v1985_v4 = vld [vmem:[#allocation2 + $0x48] sm:$0xff]   ;;  %v2116_v22 = vmov 1966171168   ;;  %v202_v24 = vlaneseq }
  0x27   :  { %v1982_v1 = vld [vmem:[#allocation2 + $0xc0] sm:$0xff]   ;;  %1824 = vmatprep.subr.bf16.mxu0 %v1981_v0  ;;  %v1986_v5 = vld [vmem:[#allocation2 + $0xc8] sm:$0xff]   ;;  %v1989_v8 = vld [vmem:[#allocation2 + $0x50] sm:$0xff]   ;;  %v200_v23 = vunpack.c.l.s4 %v2116_v22  ;;  %vm2118_vm0 = vmmov 0  }
  0x28   :  { %v1983_v2 = vld [vmem:[#allocation2] sm:$0xff]   ;;  %1846 = vmatprep.subr.bf16.mxu1 %v1982_v1  ;;  %v1987_v6 = vld [vmem:[#allocation2 + $0x8] sm:$0xff]   ;;  %v1990_v9 = vld [vmem:[#allocation2 + $0xd0] sm:$0xff]   ;;  %v2195_v30 = vshrl.u32 %v202_v24, 7 }
  0x29   :  { %v1984_v3 = vld [vmem:[#allocation2 + $0x80] sm:$0xff]   ;;  %1825 = vmatpush3.bf16.msra.mxu0 %v1983_v2  ;;  %v1988_v7 = vld [vmem:[#allocation2 + $0x88] sm:$0xff]   ;;  %v1991_v10 = vld [vmem:[#allocation2 + $0x10] sm:$0xff]   ;;  %v201_v29 = vunpack.c.0.s8 %v200_v23 }
  0x2a   :  { %1847 = vmatpush3.bf16.msra.mxu1 %v1984_v3  ;;  %1826 = vmatprep.subr.bf16.mxu0 %v1985_v4  ;;  %v1992_v11 = vld [vmem:[#allocation2 + $0x90] sm:$0xff]   ;;  %v1993_v12 = vld [vmem:[#allocation2 + $0x58] sm:$0xff]   ;;  %v1997_v16 = vld [vmem:[#allocation2 + $0x60] sm:$0xff]  }
  0x2b   :  { %1848 = vmatprep.subr.bf16.mxu1 %v1986_v5  ;;  %v1994_v13 = vld [vmem:[#allocation2 + $0xd8] sm:$0xff]   ;;  %v1998_v17 = vld [vmem:[#allocation2 + $0xe0] sm:$0xff]   ;;  %v2001_v20 = vld [vmem:[#allocation2 + $0x68] sm:$0xff]   ;;  %v2198_v35 = vsub.s32 %v201_v29, %v2195_v30 }
  0x2c   :  { %v1995_v14 = vld [vmem:[#allocation2 + $0x18] sm:$0xff]   ;;  %v1999_v18 = vld [vmem:[#allocation2 + $0x20] sm:$0xff]   ;;  %v2002_v21 = vld [vmem:[#allocation2 + $0xe8] sm:$0xff]  }
  0x2d   :  { %1827 = vmatpush3.bf16.msra.mxu0 %v1987_v6  ;;  %v1996_v15 = vld [vmem:[#allocation2 + $0x98] sm:$0xff]   ;;  %v2000_v19 = vld [vmem:[#allocation2 + $0xa0] sm:$0xff]   ;;  %v2003_v25 = vld [vmem:[#allocation2 + $0x28] sm:$0xff]  }
  0x2e   :  { %1849 = vmatpush3.bf16.msra.mxu1 %v1988_v7  ;;  %1828 = vmatprep.subr.bf16.mxu0 %v1989_v8  ;;  %v2004_v26 = vld [vmem:[#allocation2 + $0xa8] sm:$0xff]   ;;  %v2005_v27 = vld [vmem:[#allocation2 + $0x70] sm:$0xff]   ;;  %v2009_v33 = vld [vmem:[#allocation2 + $0x78] sm:$0xff]  }
  0x2f   :  { %1850 = vmatprep.subr.bf16.mxu1 %v1990_v9  ;;  %v2006_v28 = vld [vmem:[#allocation2 + $0xf0] sm:$0xff]   ;;  %v2010_v34 = vld [vmem:[#allocation2 + $0xf8] sm:$0xff]   ;;  %v61_v38 = vld [vmem:[%s2313_s0] sm:$0xff] }
  0x30   :  { %v2007_v31 = vld [vmem:[#allocation2 + $0x30] sm:$0xff]   ;;  %v2011_v36 = vld [vmem:[#allocation2 + $0x38] sm:$0xff]   ;;  %v198_v39 = vcombine.high %v61_v38, %v61_v38  ;;  %v205_v40 = vrot.slane %v61_v38, %v2198_v35  ;;  %v2014_v41 = vld [vmem:[#allocation2 + $0x140] sm:$0xff]  }
  0x31   :  { %1829 = vmatpush3.bf16.msra.mxu0 %v1991_v10  ;;  %v2008_v32 = vld [vmem:[#allocation2 + $0xb0] sm:$0xff]   ;;  %v2012_v37 = vld [vmem:[#allocation2 + $0xb8] sm:$0xff]   ;;  %v2015_v42 = vld [vmem:[#allocation2 + $0x1c0] sm:$0xff]  }
  0x32   :  { %1851 = vmatpush3.bf16.msra.mxu1 %v1992_v11  ;;  %1830 = vmatprep.subr.bf16.mxu0 %v1993_v12  ;;  %v213_v43 = vcombine.high %v205_v40, %v205_v40  ;;  %v221_v44 = vrot.slane %v205_v40, %v2198_v35  ;;  %v2206_v45 = vrot.slane %v198_v39, %v2198_v35  ;;  %v2016_v46 = vld [vmem:[#allocation2 + $0x100] sm:$0xff]   ;;  %v2018_v51 = vld [vmem:[#allocation2 + $0x148] sm:$0xff]   ;;  %v2022_v58 = vld [vmem:[#allocation2 + $0x150] sm:$0xff]  }
  0x33   :  { %1852 = vmatprep.subr.bf16.mxu1 %v1994_v13  ;;  %v2017_v48 = vld [vmem:[#allocation2 + $0x180] sm:$0xff]   ;;  %v2019_v53 = vld [vmem:[#allocation2 + $0x1c8] sm:$0xff]   ;;  %v2023_v59 = vld [vmem:[#allocation2 + $0x1d0] sm:$0xff]  }
  0x34   :  { %v235_v47 = vrot.slane %v213_v43, %v2198_v35  ;;  %v214_v49 = vcombine.high %v2206_v45, %v2206_v45  ;;  %v243_v50 = vcombine.high %v221_v44, %v221_v44  ;;  %v2020_v55 = vld [vmem:[#allocation2 + $0x108] sm:$0xff]   ;;  %v2024_v60 = vld [vmem:[#allocation2 + $0x110] sm:$0xff]   ;;  %v2026_v62 = vld [vmem:[#allocation2 + $0x158] sm:$0xff]  }
  0x35   :  { %1831 = vmatpush3.bf16.msra.mxu0 %v1995_v14  ;;  %v2021_v56 = vld [vmem:[#allocation2 + $0x188] sm:$0xff]   ;;  %v2025_v61 = vld [vmem:[#allocation2 + $0x190] sm:$0xff]   ;;  %v2027_v63 = vld [vmem:[#allocation2 + $0x1d8] sm:$0xff]  }
  0x36   :  { %1853 = vmatpush3.bf16.msra.mxu1 %v1996_v15  ;;  %1832 = vmatprep.subr.bf16.mxu0 %v1997_v16  ;;  %v245_v52 = vcombine.high %v235_v47, %v235_v47  ;;  %v242_v54 = vrot.slane %v214_v49, %v2198_v35  ;;  %v2028_v0 = vld [vmem:[#allocation2 + $0x118] sm:$0xff]   ;;  %v2030_v2 = vld [vmem:[#allocation2 + $0x160] sm:$0xff]   ;;  %v2034_v6 = vld [vmem:[#allocation2 + $0x168] sm:$0xff]  }
  0x37   :  { %1854 = vmatprep.subr.bf16.mxu1 %v1998_v17  ;;  %671 = vmatprep.mubr.bf16.mxu0 %v235_v47  ;;  %v2029_v1 = vld [vmem:[#allocation2 + $0x198] sm:$0xff]   ;;  %v2031_v3 = vld [vmem:[#allocation2 + $0x1e0] sm:$0xff]   ;;  %v2035_v7 = vld [vmem:[#allocation2 + $0x1e8] sm:$0xff]  }
  0x38   :  { %711 = vmatprep.mubr.bf16.mxu1 %v245_v52  ;;  %v246_v57 = vcombine.high %v242_v54, %v242_v54  ;;  %v2032_v4 = vld [vmem:[#allocation2 + $0x120] sm:$0xff]   ;;  %v2036_v8 = vld [vmem:[#allocation2 + $0x128] sm:$0xff]   ;;  %v2038_v10 = vld [vmem:[#allocation2 + $0x170] sm:$0xff]  }
  0x39   :  { %1833 = vmatpush3.bf16.msra.mxu0 %v1999_v18  ;;  %v2033_v5 = vld [vmem:[#allocation2 + $0x1a0] sm:$0xff]   ;;  %v2037_v9 = vld [vmem:[#allocation2 + $0x1a8] sm:$0xff]   ;;  %v2039_v11 = vld [vmem:[#allocation2 + $0x1f0] sm:$0xff]   ;;  %v228_v18 = vrot.slane %v2206_v45, %v2198_v35 }
  0x3a   :  { %1855 = vmatpush3.bf16.msra.mxu1 %v2000_v19  ;;  %1834 = vmatprep.subr.bf16.mxu0 %v2001_v20  ;;  %v2040_v12 = vld [vmem:[#allocation2 + $0x130] sm:$0xff]   ;;  %v2042_v14 = vld [vmem:[#allocation2 + $0x178] sm:$0xff]   ;;  %v2046_v20 = vld [vmem:[%s2316_s3] sm:$0xff]  }
  0x3b   :  { %1856 = vmatprep.subr.bf16.mxu1 %v2002_v21  ;;  %v2041_v13 = vld [vmem:[#allocation2 + $0x1b0] sm:$0xff]   ;;  %v2043_v15 = vld [vmem:[#allocation2 + $0x1f8] sm:$0xff]   ;;  %v244_v19 = vcombine.high %v228_v18, %v228_v18  ;;  %v2117_v21 = vmov 0.0   ;;  %v2047_v22 = vld [vmem:[%s2316_s3 + $0x8] sm:$0xff]  }
  0x3c   :  { %v2044_v16 = vld [vmem:[#allocation2 + $0x138] sm:$0xff]   ;;  %v2048_v23 = vld [vmem:[%s2316_s3 + $0x10] sm:$0xff]   ;;  %v2054_v29 = vld [vmem:[%s2318_s5] sm:$0xff]  }
  0x3d   :  { %1835 = vmatpush3.bf16.msra.mxu0 %v2003_v25  ;;  %v2045_v17 = vld [vmem:[#allocation2 + $0x1b8] sm:$0xff]   ;;  %v2050_v25 = vld [vmem:[%s2316_s3 + $0x20] sm:$0xff]   ;;  %v2059_v35 = vld [vmem:[%s2318_s5 + $0x28] sm:$0xff]  }
  0x3e   :  { %1857 = vmatpush3.bf16.msra.mxu1 %v2004_v26  ;;  %1836 = vmatprep.subr.bf16.mxu0 %v2005_v27  ;;  %v2049_v24 = vld [vmem:[%s2316_s3 + $0x18] sm:$0xff]   ;;  %v2051_v26 = vld [vmem:[%s2316_s3 + $0x28] sm:$0xff]   ;;  %v2052_v27 = vld [vmem:[%s2316_s3 + $0x30] sm:$0xff]  }
  0x3f   :  { %1858 = vmatprep.subr.bf16.mxu1 %v2006_v28  ;;  %v2053_v28 = vld [vmem:[%s2316_s3 + $0x38] sm:$0xff]  }
  0x41   :  { %1837 = vmatpush3.bf16.msra.mxu0 %v2007_v31  ;;  %v2055_v31 = vld [vmem:[%s2318_s5 + $0x8] sm:$0xff]  }
  0x42   :  { %1859 = vmatpush3.bf16.msra.mxu1 %v2008_v32  ;;  %1838 = vmatprep.subr.bf16.mxu0 %v2009_v33  ;;  %v2056_v32 = vld [vmem:[%s2318_s5 + $0x10] sm:$0xff]   ;;  %v2057_v33 = vld [vmem:[%s2318_s5 + $0x18] sm:$0xff]  }
  0x43   :  { %1860 = vmatprep.subr.bf16.mxu1 %v2010_v34  ;;  %v2058_v34 = vld [vmem:[%s2318_s5 + $0x20] sm:$0xff]  }
  0x45   :  { %1839 = vmatpush3.bf16.msra.mxu0 %v2011_v36 }
  0x46   :  { %1861 = vmatpush3.bf16.msra.mxu1 %v2012_v37  ;;  %1868 = vmatprep.subr.bf16.mxu0 %v2014_v41  ;;  %v1677_v37 = vld [vmem:[%s2315_s2] ss:$0 sm:$0xff] }
  0x47   :  { %1890 = vmatprep.subr.bf16.mxu1 %v2015_v42 }
  0x48   :  { %672 = vmatmul.mubr.bf16.vlgmr.msra.gmra.mrb[0].mxu0 %v221_v44 }
  0x49   :  { %1869 = vmatpush3.bf16.msra.mxu0 %v2016_v46  ;;  %712 = vmatmul.mubr.bf16.vlgmr.msra.gmra.mrb[0].mxu1 %v243_v50 }
  0x4a   :  { %1870 = vmatprep.subr.bf16.mxu0 %v2018_v51  ;;  %1891 = vmatpush3.bf16.msra.mxu1 %v2017_v48 }
  0x4b   :  { %751 = vmatprep.mubr.bf16.mxu0 %v242_v54  ;;  %1892 = vmatprep.subr.bf16.mxu1 %v2019_v53 }
  0x4c   :  { %791 = vmatprep.mubr.bf16.mxu1 %v246_v57 }
  0x4d   :  { %1871 = vmatpush3.bf16.msra.mxu0 %v2020_v55 }
  0x4e   :  { %1872 = vmatprep.subr.bf16.mxu0 %v2022_v58  ;;  %1893 = vmatpush3.bf16.msra.mxu1 %v2021_v56 }
  0x4f   :  { %1894 = vmatprep.subr.bf16.mxu1 %v2023_v59 }
  0x51   :  { %1873 = vmatpush3.bf16.msra.mxu0 %v2024_v60 }
  0x52   :  { %1874 = vmatprep.subr.bf16.mxu0 %v2026_v62  ;;  %1895 = vmatpush3.bf16.msra.mxu1 %v2025_v61 }
  0x53   :  { %1896 = vmatprep.subr.bf16.mxu1 %v2027_v63  ;;  %v2060_v63 = vld [vmem:[%s2318_s5 + $0x30] sm:$0xff]  }
  0x55   :  { %1875 = vmatpush3.bf16.msra.mxu0 %v2028_v0  ;;  %v2061_v0 = vld [vmem:[%s2318_s5 + $0x38] sm:$0xff]  }
  0x56   :  { %1876 = vmatprep.subr.bf16.mxu0 %v2030_v2  ;;  %1897 = vmatpush3.bf16.msra.mxu1 %v2029_v1  ;;  %v1027_v1 = vld [vmem:[#allocation4] sm:$0xff] }
  0x57   :  { %1898 = vmatprep.subr.bf16.mxu1 %v2031_v3  ;;  %v1031_v2 = vld [vmem:[#allocation4 + $0x20] sm:$0xff]  ;;  %v1028_v3 = vld [vmem:[#allocation4 + $0x8] sm:$0xff] }
  0x59   :  { %1877 = vmatpush3.bf16.msra.mxu0 %v2032_v4  ;;  %v1760_v4 = vcombine.low %v1027_v1, %v1031_v2 }
  0x5a   :  { %1878 = vmatprep.subr.bf16.mxu0 %v2034_v6  ;;  %1899 = vmatpush3.bf16.msra.mxu1 %v2033_v5  ;;  %v1761_v5 = vcombine.high %v1027_v1, %v1031_v2  ;;  %v1032_v6 = vld [vmem:[#allocation4 + $0x28] sm:$0xff]  ;;  %v1083_v2 = vld [vmem:[#allocation4 + $0x1c0] sm:$0xff] }
  0x5b   :  { %1900 = vmatprep.subr.bf16.mxu1 %v2035_v7  ;;  %v1035_v7 = vld [vmem:[#allocation4 + $0x40] sm:$0xff] }
  0x5d   :  { %1879 = vmatpush3.bf16.msra.mxu0 %v2036_v8  ;;  %v1039_v8 = vld [vmem:[#allocation4 + $0x60] sm:$0xff] }
  0x5e   :  { %1880 = vmatprep.subr.bf16.mxu0 %v2038_v10  ;;  %1901 = vmatpush3.bf16.msra.mxu1 %v2037_v9  ;;  %v1762_v9 = vcombine.low %v1028_v3, %v1032_v6  ;;  %v1763_v10 = vcombine.high %v1028_v3, %v1032_v6  ;;  %v1087_v3 = vld [vmem:[#allocation4 + $0x1e0] sm:$0xff]  ;;  %v1088_v6 = vld [vmem:[#allocation4 + $0x1e8] sm:$0xff] }
  0x5f   :  { %1902 = vmatprep.subr.bf16.mxu1 %v2039_v11  ;;  %v1769_v11 = vcombine.high %v1035_v7, %v1039_v8 }
  0x61   :  { %1881 = vmatpush3.bf16.msra.mxu0 %v2040_v12  ;;  %v1768_v12 = vcombine.low %v1035_v7, %v1039_v8  ;;  %v1816_v7 = vcombine.low %v1083_v2, %v1087_v3 }
  0x62   :  { %1882 = vmatprep.subr.bf16.mxu0 %v2042_v14  ;;  %1903 = vmatpush3.bf16.msra.mxu1 %v2041_v13  ;;  %v1043_v13 = vld [vmem:[#allocation4 + $0x80] sm:$0xff] }
  0x63   :  { %1904 = vmatprep.subr.bf16.mxu1 %v2043_v15  ;;  %v1047_v14 = vld [vmem:[#allocation4 + $0xa0] sm:$0xff] }
  0x64   :  { %v1777_v15 = vcombine.high %v1043_v13, %v1047_v14 }
  0x65   :  { %1883 = vmatpush3.bf16.msra.mxu0 %v2044_v16  ;;  %v1776_v16 = vcombine.low %v1043_v13, %v1047_v14  ;;  %v2119_v13 = vmov 0  }
  0x66   :  { %1905 = vmatpush3.bf16.msra.mxu1 %v2045_v17  ;;  %1930 = vmatprep.subr.bf16.mxu0 %v2117_v21  ;;  %v1051_v17 = vld [vmem:[#allocation4 + $0xc0] sm:$0xff] }
  0x67   :  { %1950 = vmatprep.subr.bf16.mxu1 %v2117_v21 }
  0x68   :  { %752 = vmatmul.mubr.bf16.vlgmr.msra.gmra.mrb[4].mxu0 %v228_v18  ;;  %v1055_v18 = vld [vmem:[#allocation4 + $0xe0] sm:$0xff] }
  0x69   :  { %792 = vmatmul.mubr.bf16.vlgmr.msra.gmra.mrb[4].mxu1 %v244_v19  ;;  %1931 = vmatpush3.bf16.msra.mxu0 %v2046_v20  ;;  %v1785_v19 = vcombine.high %v1051_v17, %v1055_v18  ;;  %v1784_v20 = vcombine.low %v1051_v17, %v1055_v18 }
  0x6a   :  { %1932 = vmatprep.subr.bf16.mxu0 %v2117_v21  ;;  %1946 = vmatprep.mubr.msk.bf16.mxu0 %vm2118_vm0, %v2117_v21 }
  0x6b   :  { %1966 = vmatprep.mubr.msk.bf16.mxu1 %vm2118_vm0, %v2117_v21  ;;  %1951 = vmatpush3.bf16.msra.mxu1 %v2054_v29  ;;  %v1075_v29 = vld [vmem:[#allocation4 + $0x180] sm:$0xff] }
  0x6c   :  { %1952 = vmatprep.subr.bf16.mxu1 %v2117_v21 }
  0x6d   :  { %1933 = vmatpush3.bf16.msra.mxu0 %v2047_v22  ;;  %v1063_v22 = vld [vmem:[#allocation4 + $0x120] sm:$0xff] }
  0x6e   :  { %1934 = vmatprep.subr.bf16.mxu0 %v2117_v21 }
  0x6f   :  { %1953 = vmatpush3.bf16.msra.mxu1 %v2055_v31  ;;  %v1079_v31 = vld [vmem:[#allocation4 + $0x1a0] sm:$0xff] }
  0x70   :  { %1954 = vmatprep.subr.bf16.mxu1 %v2117_v21 }
  0x71   :  { %1935 = vmatpush3.bf16.msra.mxu0 %v2048_v23 }
  0x72   :  { %1936 = vmatprep.subr.bf16.mxu0 %v2117_v21 }
  0x73   :  { %1955 = vmatpush3.bf16.msra.mxu1 %v2056_v32  ;;  %v1809_v32 = vcombine.high %v1075_v29, %v1079_v31 }
  0x74   :  { %1956 = vmatprep.subr.bf16.mxu1 %v2117_v21 }
  0x75   :  { %1937 = vmatpush3.bf16.msra.mxu0 %v2049_v24 }
  0x76   :  { %1938 = vmatprep.subr.bf16.mxu0 %v2117_v21 }
  0x77   :  { %1957 = vmatpush3.bf16.msra.mxu1 %v2057_v33  ;;  %v1808_v33 = vcombine.low %v1075_v29, %v1079_v31 }
  0x78   :  { %1958 = vmatprep.subr.bf16.mxu1 %v2117_v21 }
  0x79   :  { %1939 = vmatpush3.bf16.msra.mxu0 %v2050_v25  ;;  %v1067_v25 = vld [vmem:[#allocation4 + $0x140] sm:$0xff] }
  0x7a   :  { %1940 = vmatprep.subr.bf16.mxu0 %v2117_v21 }
  0x7b   :  { %1959 = vmatpush3.bf16.msra.mxu1 %v2058_v34  ;;  %v1742_v34 = vld [vmem:[%s2317_s4] ss:$0 sm:$0xff] }
  0x7c   :  { %1960 = vmatprep.subr.bf16.mxu1 %v2117_v21 }
  0x7d   :  { %1941 = vmatpush3.bf16.msra.mxu0 %v2051_v26  ;;  %v1071_v26 = vld [vmem:[#allocation4 + $0x160] sm:$0xff] }
  0x7e   :  { %1942 = vmatprep.subr.bf16.mxu0 %v2117_v21 }
  0x7f   :  { %1961 = vmatpush3.bf16.msra.mxu1 %v2059_v35 }
  0x80   :  { %1962 = vmatprep.subr.bf16.mxu1 %v2117_v21 }
  0x81   :  { %1943 = vmatpush3.bf16.msra.mxu0 %v2052_v27  ;;  %v1801_v27 = vcombine.high %v1067_v25, %v1071_v26 }
  0x82   :  { %1944 = vmatprep.subr.bf16.mxu0 %v2117_v21 }
  0x83   :  { %1963 = vmatpush3.bf16.msra.mxu1 %v2060_v63 }
  0x84   :  { %1964 = vmatprep.subr.bf16.mxu1 %v2117_v21  ;;  %v1059_v21 = vld [vmem:[#allocation4 + $0x100] sm:$0xff] }
  0x85   :  { %1945 = vmatpush3.bf16.msra.mxu0 %v2053_v28  ;;  %v1793_v23 = vcombine.high %v1059_v21, %v1063_v22  ;;  %v1792_v24 = vcombine.low %v1059_v21, %v1063_v22  ;;  %v1800_v28 = vcombine.low %v1067_v25, %v1071_v26  ;;  %v1041_v25 = vld [vmem:[#allocation4 + $0x70] sm:$0xff]  ;;  %v1038_v26 = vld [vmem:[#allocation4 + $0x58] sm:$0xff] }
  0x86   :  { %1453 = vmatprep.subr.bf16.mxu0 %v1761_v5  ;;  %v1817_v5 = vcombine.high %v1083_v2, %v1087_v3  ;;  %v1077_v2 = vld [vmem:[#allocation4 + $0x190] sm:$0xff] }
  0x87   :  { %1965 = vmatpush3.bf16.msra.mxu1 %v2061_v0  ;;  %v1081_v3 = vld [vmem:[#allocation4 + $0x1b0] sm:$0xff] }
  0x88   :  { %1494 = vmatprep.subr.bf16.mxu1 %v1763_v10  ;;  %v1029_v10 = vld [vmem:[#allocation4 + $0x10] sm:$0xff] }
 0x11b   :  { %v1840_v36 = vpop.f32.mrb[0].mxu0 }
 0x11c   :  { %v1841_v38 = vpop.f32.mrb[1].mxu0  ;;  %v1862_v39 = vpop.f32.mrb[0].mxu1 }
 0x11d   :  { %v1842_v40 = vadd.f32 %v1841_v38, %v1840_v36  ;;  %v1843_v41 = vpop.f32.mrb[2].mxu0  ;;  %v1863_v42 = vpop.f32.mrb[1].mxu1 }
 0x11e   :  { %v1844_v43 = vpop.f32.mrb[3].mxu0  ;;  %v1864_v45 = vadd.f32 %v1863_v42, %v1862_v39  ;;  %v1865_v46 = vpop.f32.mrb[2].mxu1  ;;  %v1036_v39 = vld [vmem:[#allocation4 + $0x48] sm:$0xff] }
 0x11f   :  { %v674_v44 = vadd.f32 %v1842_v40, %v1677_v37  ;;  %v1866_v47 = vpop.f32.mrb[3].mxu1  ;;  %v1040_v40 = vld [vmem:[#allocation4 + $0x68] sm:$0xff] }
 0x120   :  { %v1048_v46 = vld [vmem:[#allocation4 + $0xa8] sm:$0xff]  ;;  %v1770_v47 = vcombine.low %v1036_v39, %v1040_v40 }
 0x121   :  { %v714_v48 = vadd.f32 %v1864_v45, %v674_v44  ;;  %v1771_v44 = vcombine.high %v1036_v39, %v1040_v40  ;;  %v1044_v45 = vld [vmem:[#allocation4 + $0x88] sm:$0xff] }
 0x13b   :  { %v1884_v49 = vpop.f32.mrb[4].mxu0 }
 0x13c   :  { %v1885_v50 = vpop.f32.mrb[5].mxu0  ;;  %v1906_v51 = vpop.f32.mrb[4].mxu1 }
 0x13d   :  { %v1886_v52 = vadd.f32 %v1885_v50, %v1884_v49  ;;  %v1887_v53 = vpop.f32.mrb[6].mxu0  ;;  %v1907_v54 = vpop.f32.mrb[5].mxu1  ;;  %v1052_v49 = vld [vmem:[#allocation4 + $0xc8] sm:$0xff] }
 0x13e   :  { %v1888_v55 = vpop.f32.mrb[7].mxu0  ;;  %v1908_v57 = vadd.f32 %v1907_v54, %v1906_v51  ;;  %v1909_v58 = vpop.f32.mrb[6].mxu1  ;;  %v1056_v50 = vld [vmem:[#allocation4 + $0xe8] sm:$0xff]  ;;  %v1778_v51 = vcombine.low %v1044_v45, %v1048_v46 }
 0x13f   :  { %v754_v56 = vadd.f32 %v1886_v52, %v714_v48  ;;  %v1910_v59 = vpop.f32.mrb[7].mxu1  ;;  %v1779_v48 = vcombine.high %v1044_v45, %v1048_v46  ;;  %v1787_v52 = vcombine.high %v1052_v49, %v1056_v50  ;;  %v1060_v53 = vld [vmem:[#allocation4 + $0x108] sm:$0xff]  ;;  %v1786_v55 = vcombine.low %v1052_v49, %v1056_v50  ;;  %v1058_v45 = vld [vmem:[#allocation4 + $0xf8] sm:$0xff]  ;;  %v1061_v50 = vld [vmem:[#allocation4 + $0x110] sm:$0xff] }
 0x140   :  { %v1064_v54 = vld [vmem:[#allocation4 + $0x128] sm:$0xff] }
 0x141   :  { %v794_v60 = vadd.f32 %v1908_v57, %v754_v56  ;;  %v1795_v56 = vcombine.high %v1060_v53, %v1064_v54  ;;  %v1068_v57 = vld [vmem:[#allocation4 + $0x148] sm:$0xff]  ;;  %v1794_v59 = vcombine.low %v1060_v53, %v1064_v54  ;;  %v1066_v53 = vld [vmem:[#allocation4 + $0x138] sm:$0xff] }
 0x142   :  { %v1072_v58 = vld [vmem:[#allocation4 + $0x168] sm:$0xff] }
 0x143   :  { %v799_v61 = vmax.f32 %v794_v60, 0.0  ;;  %v1803_v60 = vcombine.high %v1068_v57, %v1072_v58  ;;  %v1802_v63 = vcombine.low %v1068_v57, %v1072_v58  ;;  %v1069_v58 = vld [vmem:[#allocation4 + $0x150] sm:$0xff] }
 0x145   :  { %v800_v62 = vpack.c.bf16 %v799_v61, %v799_v61  ;;  %v1076_v61 = vld [vmem:[#allocation4 + $0x188] sm:$0xff] }
 0x147   :  { %1947 = vmatmul.mubr.bf16.vlgmr.msra.gmra.mrb[8].mxu0 %v800_v62  ;;  %v1080_v62 = vld [vmem:[#allocation4 + $0x1a8] sm:$0xff] }
 0x148   :  { %1454 = vmatpush1.bf16.msra.mxu0 %v1760_v4  ;;  %v1811_v0 = vcombine.high %v1076_v61, %v1080_v62  ;;  %v1810_v1 = vcombine.low %v1076_v61, %v1080_v62  ;;  %v1084_v4 = vld [vmem:[#allocation4 + $0x1c8] sm:$0xff]  ;;  %1485 = vmatprep.mubr.bf16.mxu0 %v2119_v13  ;;  %v1074_v61 = vld [vmem:[#allocation4 + $0x178] sm:$0xff] }
 0x149   :  { %1455 = vmatprep.subr.bf16.mxu0 %v1769_v11  ;;  %v1818_v8 = vcombine.low %v1084_v4, %v1088_v6  ;;  %v1033_v11 = vld [vmem:[#allocation4 + $0x30] sm:$0xff] }
 0x14a   :  { %v1764_v14 = vcombine.low %v1029_v10, %v1033_v11 }
 0x14c   :  { %1456 = vmatpush1.bf16.msra.mxu0 %v1768_v12  ;;  %v1030_v12 = vld [vmem:[#allocation4 + $0x18] sm:$0xff] }
 0x14d   :  { %1457 = vmatprep.subr.bf16.mxu0 %v1777_v15  ;;  %v1765_v15 = vcombine.high %v1029_v10, %v1033_v11  ;;  %v1085_v10 = vld [vmem:[#allocation4 + $0x1d0] sm:$0xff] }
 0x14e   :  { %v1089_v11 = vld [vmem:[#allocation4 + $0x1f0] sm:$0xff] }
 0x150   :  { %1458 = vmatpush1.bf16.msra.mxu0 %v1776_v16  ;;  %v1034_v16 = vld [vmem:[#allocation4 + $0x38] sm:$0xff] }
 0x151   :  { %1459 = vmatprep.subr.bf16.mxu0 %v1785_v19  ;;  %v1766_v17 = vcombine.low %v1030_v12, %v1034_v16  ;;  %v1767_v18 = vcombine.high %v1030_v12, %v1034_v16  ;;  %v1751_v19 = vld [vmem:[%s2319_s6] ss:$0 sm:$0xff]  ;;  %v1086_v12 = vld [vmem:[#allocation4 + $0x1d8] sm:$0xff]  ;;  %v1821_v16 = vcombine.high %v1085_v10, %v1089_v11 }
 0x154   :  { %1460 = vmatpush1.bf16.msra.mxu0 %v1784_v20 }
 0x155   :  { %1461 = vmatprep.subr.bf16.mxu0 %v1793_v23  ;;  %v1037_v23 = vld [vmem:[#allocation4 + $0x50] sm:$0xff] }
 0x158   :  { %1462 = vmatpush1.bf16.msra.mxu0 %v1792_v24 }
 0x159   :  { %1463 = vmatprep.subr.bf16.mxu0 %v1801_v27  ;;  %v1042_v27 = vld [vmem:[#allocation4 + $0x78] sm:$0xff] }
 0x15a   :  { %v1774_v39 = vcombine.low %v1038_v26, %v1042_v27 }
 0x15c   :  { %1464 = vmatpush1.bf16.msra.mxu0 %v1800_v28 }
 0x15d   :  { %1465 = vmatprep.subr.bf16.mxu0 %v1809_v32  ;;  %v1773_v32 = vcombine.high %v1037_v23, %v1041_v25 }
 0x160   :  { %1466 = vmatpush1.bf16.msra.mxu0 %v1808_v33  ;;  %v1775_v33 = vcombine.high %v1038_v26, %v1042_v27 }
 0x161   :  { %1467 = vmatprep.subr.bf16.mxu0 %v1817_v5  ;;  %v1082_v5 = vld [vmem:[#allocation4 + $0x1b8] sm:$0xff] }
 0x164   :  { %1468 = vmatpush1.bf16.msra.mxu0 %v1816_v7 }
 0x165   :  { %1535 = vmatprep.subr.bf16.mxu0 %v1765_v15 }
 0x21a   :  { %v906_v35 = vpop.f32.mrb[8].mxu0 }
 0x21b   :  { %v907_v36 = vadd.f32 %v1742_v34, %v906_v35  ;;  %v1948_v37 = vpop.f32.mrb[9].mxu0  ;;  %v1045_v34 = vld [vmem:[#allocation4 + $0x90] sm:$0xff] }
 0x21c   :  { %v909_v38 = vpop.f32.mrb[10].mxu0  ;;  %v1049_v35 = vld [vmem:[#allocation4 + $0xb0] sm:$0xff]  ;;  %v1050_v37 = vld [vmem:[#allocation4 + $0xb8] sm:$0xff] }
 0x21d   :  { %v912_v41 = vmax.f32 %v907_v36, 0.0  ;;  %v1949_v42 = vpop.f32.mrb[11].mxu0  ;;  %v1046_v36 = vld [vmem:[#allocation4 + $0x98] sm:$0xff]  ;;  %v1772_v38 = vcombine.low %v1037_v23, %v1041_v25  ;;  %v1781_v40 = vcombine.high %v1045_v34, %v1049_v35  ;;  %v1780_v46 = vcombine.low %v1045_v34, %v1049_v35 }
 0x21e   :  { %v1053_v42 = vld [vmem:[#allocation4 + $0xd0] sm:$0xff]  ;;  %v1099_v23 = vsub.s32 1, %v2195_v30  ;;  %v2120_v25 = vmov 1983009808  }
 0x21f   :  { %v913_v43 = vpack.c.bf16 %v912_v41, %v912_v41  ;;  %v1783_v41 = vcombine.high %v1046_v36, %v1050_v37  ;;  %v1636_v26 = vunpack.c.l.s4 %v2120_v25 }
 0x221   :  { %1967 = vmatmul.mubr.bf16.vlgmr.msra.gmra.mrb[8].mxu1 %v913_v43  ;;  %v1057_v43 = vld [vmem:[#allocation4 + $0xf0] sm:$0xff]  ;;  %v1637_v34 = vunpack.c.0.s8 %v1636_v26 }
 0x222   :  { %1495 = vmatpush1.bf16.msra.mxu1 %v1762_v9  ;;  %v1819_v9 = vcombine.high %v1084_v4, %v1088_v6  ;;  %1526 = vmatprep.mubr.bf16.mxu1 %v2119_v13  ;;  %v1788_v54 = vcombine.low %v1053_v42, %v1057_v43  ;;  %v1078_v4 = vld [vmem:[#allocation4 + $0x198] sm:$0xff] }
 0x223   :  { %1496 = vmatprep.subr.bf16.mxu1 %v1771_v44  ;;  %v1054_v44 = vld [vmem:[#allocation4 + $0xd8] sm:$0xff]  ;;  %v1814_v15 = vcombine.low %v1078_v4, %v1082_v5 }
 0x224   :  { %v1791_v49 = vcombine.high %v1054_v44, %v1058_v45 }
 0x226   :  { %1497 = vmatpush1.bf16.msra.mxu1 %v1770_v47  ;;  %v1782_v47 = vcombine.low %v1046_v36, %v1050_v37 }
 0x227   :  { %1498 = vmatprep.subr.bf16.mxu1 %v1779_v48  ;;  %v1789_v48 = vcombine.high %v1053_v42, %v1057_v43 }
 0x22a   :  { %1499 = vmatpush1.bf16.msra.mxu1 %v1778_v51  ;;  %v1065_v51 = vld [vmem:[#allocation4 + $0x130] sm:$0xff] }
 0x22b   :  { %1500 = vmatprep.subr.bf16.mxu1 %v1787_v52  ;;  %v1062_v52 = vld [vmem:[#allocation4 + $0x118] sm:$0xff]  ;;  %v1796_v62 = vcombine.low %v1061_v50, %v1065_v51 }
 0x22c   :  { %v1799_v57 = vcombine.high %v1062_v52, %v1066_v53 }
 0x22e   :  { %1501 = vmatpush1.bf16.msra.mxu1 %v1786_v55  ;;  %v1790_v55 = vcombine.low %v1054_v44, %v1058_v45 }
 0x22f   :  { %1502 = vmatprep.subr.bf16.mxu1 %v1795_v56  ;;  %v1797_v56 = vcombine.high %v1061_v50, %v1065_v51 }
 0x232   :  { %1503 = vmatpush1.bf16.msra.mxu1 %v1794_v59  ;;  %v1073_v59 = vld [vmem:[#allocation4 + $0x170] sm:$0xff] }
 0x233   :  { %1504 = vmatprep.subr.bf16.mxu1 %v1803_v60  ;;  %v1070_v60 = vld [vmem:[#allocation4 + $0x158] sm:$0xff]  ;;  %v1804_v6 = vcombine.low %v1069_v58, %v1073_v59 }
 0x234   :  { %v1806_v7 = vcombine.low %v1070_v60, %v1074_v61 }
 0x236   :  { %1505 = vmatpush1.bf16.msra.mxu1 %v1802_v63  ;;  %v1798_v63 = vcombine.low %v1062_v52, %v1066_v53 }
 0x237   :  { %1506 = vmatprep.subr.bf16.mxu1 %v1811_v0  ;;  %v1805_v0 = vcombine.high %v1069_v58, %v1073_v59  ;;  %v1123_v58 = vsub.s32 7, %v2195_v30 }
 0x23a   :  { %1507 = vmatpush1.bf16.msra.mxu1 %v1810_v1  ;;  %v1807_v1 = vcombine.high %v1070_v60, %v1074_v61 }
 0x23b   :  { %1508 = vmatprep.subr.bf16.mxu1 %v1819_v9  ;;  %v1815_v9 = vcombine.high %v1078_v4, %v1082_v5 }
 0x23e   :  { %1509 = vmatpush1.bf16.msra.mxu1 %v1818_v8  ;;  %v1813_v8 = vcombine.high %v1077_v2, %v1081_v3 }
 0x23f   :  { %1576 = vmatprep.subr.bf16.mxu1 %v1767_v18  ;;  %v1820_v18 = vcombine.low %v1085_v10, %v1089_v11 }
 0x2f4   :  { %v1019_v20 = vpop.f32.mrb[8].mxu1 }
 0x2f5   :  { %v1020_v21 = vadd.f32 %v1751_v19, %v1019_v20  ;;  %v1968_v22 = vpop.f32.mrb[9].mxu1  ;;  %v1095_v20 = vsub.s32 0, %v2195_v30 }
 0x2f6   :  { %v1022_v24 = vpop.f32.mrb[10].mxu1  ;;  %v1091_v22 = vld [vmem:[%s2321_s8] sm:$0xff] }
 0x2f7   :  { %v1025_v28 = vmax.f32 %v1020_v21, 0.0  ;;  %v1969_v29 = vpop.f32.mrb[11].mxu1  ;;  %v1103_v21 = vsub.s32 2, %v2195_v30  ;;  %v1107_v24 = vsub.s32 3, %v2195_v30  ;;  %v1096_v27 = vrot.slane %v1091_v22, %v1095_v20 }
 0x2f8   :  { %v1100_v29 = vrot.slane %v1091_v22, %v1099_v23 }
 0x2f9   :  { %v2289_v31 = vpack.c.bf16 %v1025_v28, %v1025_v28  ;;  %v1104_v28 = vrot.slane %v1091_v22, %v1103_v21 }
 0x2fb   :  { %1486 = vmatmul.mubr.bf16.vlgmr.msra.gmra.mrb[12].mxu0 %v2289_v31  ;;  %1527 = vmatmul.mubr.bf16.vlgmr.msra.gmra.mrb[12].mxu1 %v2289_v31 }
 0x2fc   :  { %1536 = vmatpush1.bf16.msra.mxu0 %v1764_v14  ;;  %1577 = vmatpush1.bf16.msra.mxu1 %v1766_v17  ;;  %v1812_v14 = vcombine.low %v1077_v2, %v1081_v3 }
 0x2fd   :  { %1537 = vmatprep.subr.bf16.mxu0 %v1773_v32  ;;  %1578 = vmatprep.subr.bf16.mxu1 %v1775_v33  ;;  %v1108_v32 = vrot.slane %v1091_v22, %v1107_v24 }
 0x2fe   :  { %1567 = vmatprep.mubr.bf16.mxu0 %v2119_v13  ;;  %1608 = vmatprep.mubr.bf16.mxu1 %v2119_v13  ;;  %v1090_v13 = vld [vmem:[#allocation4 + $0x1f8] sm:$0xff] }
 0x2ff   :  { %v1823_v17 = vcombine.high %v1086_v12, %v1090_v13  ;;  %v1822_v19 = vcombine.low %v1086_v12, %v1090_v13 }
 0x300   :  { %1538 = vmatpush1.bf16.msra.mxu0 %v1772_v38  ;;  %1579 = vmatpush1.bf16.msra.mxu1 %v1774_v39 }
 0x301   :  { %1539 = vmatprep.subr.bf16.mxu0 %v1781_v40  ;;  %1580 = vmatprep.subr.bf16.mxu1 %v1783_v41 }
 0x304   :  { %1540 = vmatpush1.bf16.msra.mxu0 %v1780_v46  ;;  %1581 = vmatpush1.bf16.msra.mxu1 %v1782_v47 }
 0x305   :  { %1541 = vmatprep.subr.bf16.mxu0 %v1789_v48  ;;  %1582 = vmatprep.subr.bf16.mxu1 %v1791_v49  ;;  %v1640_v48 = vsub.s32 %v1637_v34, %v2195_v30 }
 0x308   :  { %1542 = vmatpush1.bf16.msra.mxu0 %v1788_v54  ;;  %1583 = vmatpush1.bf16.msra.mxu1 %v1790_v55  ;;  %v1111_v55 = vsub.s32 4, %v2195_v30 }
 0x309   :  { %1543 = vmatprep.subr.bf16.mxu0 %v1797_v56  ;;  %1584 = vmatprep.subr.bf16.mxu1 %v1799_v57  ;;  %v1119_v56 = vsub.s32 6, %v2195_v30  ;;  %v1115_v57 = vsub.s32 5, %v2195_v30 }
 0x30a   :  { %v1112_v59 = vrot.slane %v1091_v22, %v1111_v55 }
 0x30b   :  { %v1120_v60 = vrot.slane %v1091_v22, %v1119_v56  ;;  %v1116_v61 = vrot.slane %v1091_v22, %v1115_v57 }
 0x30c   :  { %1544 = vmatpush1.bf16.msra.mxu0 %v1796_v62  ;;  %1585 = vmatpush1.bf16.msra.mxu1 %v1798_v63  ;;  %v1124_v62 = vrot.slane %v1091_v22, %v1123_v58 }
 0x30d   :  { %1545 = vmatprep.subr.bf16.mxu0 %v1805_v0  ;;  %1586 = vmatprep.subr.bf16.mxu1 %v1807_v1 }
 0x310   :  { %1546 = vmatpush1.bf16.msra.mxu0 %v1804_v6  ;;  %1587 = vmatpush1.bf16.msra.mxu1 %v1806_v7 }
 0x311   :  { %1547 = vmatprep.subr.bf16.mxu0 %v1813_v8  ;;  %1588 = vmatprep.subr.bf16.mxu1 %v1815_v9 }
 0x314   :  { %1548 = vmatpush1.bf16.msra.mxu0 %v1812_v14  ;;  %1589 = vmatpush1.bf16.msra.mxu1 %v1814_v15 }
 0x315   :  { %1549 = vmatprep.subr.bf16.mxu0 %v1821_v16  ;;  %1590 = vmatprep.subr.bf16.mxu1 %v1823_v17 }
 0x318   :  { %1550 = vmatpush1.bf16.msra.mxu0 %v1820_v18  ;;  %1591 = vmatpush1.bf16.msra.mxu1 %v1822_v19 }
 0x31b   :  { %1568 = vmatmul.mubr.bf16.vlgmr.msra.gmra.mrb[16].mxu0 %v2289_v31  ;;  %1609 = vmatmul.mubr.bf16.vlgmr.msra.gmra.mrb[16].mxu1 %v2289_v31 }
 0x3ce   :  { %v1487_v33 = vpop.f32.mrb[12].mxu0  ;;  %v1528_v31 = vpop.f32.mrb[12].mxu1 }
 0x3cf   :  { %v1488_v35 = vadd.f32 %v1487_v33, %v1096_v27  ;;  %v1529_v36 = vadd.f32 %v1528_v31, %v1104_v28  ;;  %v1489_v37 = vpop.f32.mrb[13].mxu0  ;;  %v1530_v38 = vpop.f32.mrb[13].mxu1 }
 0x3d0   :  { %v1490_v39 = vadd.f32 %v1489_v37, %v1100_v29  ;;  %v1531_v40 = vadd.f32 %v1530_v38, %v1108_v32  ;;  %v1491_v41 = vpop.f32.mrb[14].mxu0  ;;  %v1532_v42 = vpop.f32.mrb[14].mxu1 }
 0x3d1   :  { %v1617_v43 = vmax.f32 %v1488_v35, 0.0  ;;  %v1619_v44 = vmax.f32 %v1529_v36, 0.0  ;;  %v1492_v45 = vpop.f32.mrb[15].mxu0  ;;  %v1533_v46 = vpop.f32.mrb[15].mxu1 }
 0x3d2   :  { %v1618_v47 = vmax.f32 %v1490_v39, 0.0  ;;  %v1620_v49 = vmax.f32 %v1531_v40, 0.0 }
 0x3d4   :  { %v1633_v50 = vcombine.low %v1617_v43, %v1618_v47  ;;  %v1634_v51 = vcombine.low %v1619_v44, %v1620_v49 }
 0x3d6   :  { %v1641_v52 = vrot.slane %v1633_v50, %v1640_v48  ;;  %v1648_v53 = vrot.slane %v1634_v51, %v1640_v48 }
 0x3d8   :  { %v1649_v54 = vcombine.low %v1641_v52, %v1648_v53 }
 0x3da   :  { %1669 = vst [vmem:[%s2322_s9] sm:$0xff] %v1649_v54 }
 0x3ee   :  { %v1569_v63 = vpop.f32.mrb[16].mxu0  ;;  %v1610_v0 = vpop.f32.mrb[16].mxu1 }
 0x3ef   :  { %v1570_v1 = vadd.f32 %v1569_v63, %v1112_v59  ;;  %v1611_v2 = vadd.f32 %v1610_v0, %v1120_v60  ;;  %v1571_v3 = vpop.f32.mrb[17].mxu0  ;;  %v1612_v4 = vpop.f32.mrb[17].mxu1 }
 0x3f0   :  { %v1572_v5 = vadd.f32 %v1571_v3, %v1116_v61  ;;  %v1613_v6 = vadd.f32 %v1612_v4, %v1124_v62  ;;  %v1573_v7 = vpop.f32.mrb[18].mxu0  ;;  %v1614_v8 = vpop.f32.mrb[18].mxu1 }
 0x3f1   :  { %v1621_v9 = vmax.f32 %v1570_v1, 0.0  ;;  %v1623_v10 = vmax.f32 %v1611_v2, 0.0  ;;  %v1574_v11 = vpop.f32.mrb[19].mxu0  ;;  %v1615_v12 = vpop.f32.mrb[19].mxu1 }
 0x3f2   :  { %v1622_v13 = vmax.f32 %v1572_v5, 0.0  ;;  %v1624_v30 = vmax.f32 %v1613_v6, 0.0 }
 0x3f4   :  { %v1650_v14 = vcombine.low %v1621_v9, %v1622_v13  ;;  %v1651_v15 = vcombine.low %v1623_v10, %v1624_v30 }
 0x3f6   :  { %v1658_v16 = vrot.slane %v1650_v14, %v1640_v48  ;;  %v1665_v17 = vrot.slane %v1651_v15, %v1640_v48 }
 0x3f8   :  { %v1666_v18 = vcombine.low %v1658_v16, %v1665_v17 }
 0x3fa   :  { %1670 = vst [vmem:[%s2322_s9 + $0x8] sm:$0xff] %v1666_v18 }
 0x3fb   :  { %1675 = vsyncpa [#allocation3], 1 }
 0x3fc   :  { %1676 = vsyncpa [#allocation5], 1 }

</bundles_post_ra>
